<compile_context>
chip_gen: v7x
topology: tpu7x:2x2x1
jax: 0.10.0
libtpu: 0.0.40
codegen_flags: <defaults>
</compile_context>

<pallas_src>
import functools

import jax
import jax.numpy as jnp
from jax import lax
from jax.experimental import pallas as pl
from jax.experimental.pallas import tpu as pltpu


def _round_up(x, m):
    return (x + m - 1) // m * m


def _variance_aware_loss_kernel(uah_ref, phy_ref, lab_ref, out_ref, acc_ref,
                                *, inv_temp, num_classes):
    """Accumulates per-modality masked CE / class-variance / valid counts.

    Inputs are lane-dense: logits (C, TB), labels (1, TB) int32.
    acc_ref rows: [ce_u, var_u, cnt_u, ce_p, var_p, cnt_p, unused, unused].
    """
    step = pl.program_id(0)

    @pl.when(step == 0)
    def _init():
        acc_ref[...] = jnp.zeros_like(acc_ref)

    c = num_classes
    tb = lab_ref.shape[1]
    lab = lab_ref[...]                                      # (1, TB) int32
    cls = lax.broadcasted_iota(jnp.int32, (c, tb), 0)       # class id on sublanes
    onehot = cls == lab                                     # (C, TB) bool

    inv_c = 1.0 / c
    inv_cm1 = 1.0 / (c - 1)

    def accumulate(mod_ref, row0):
        x = mod_ref[...].astype(jnp.float32)                # (C, TB)
        # valid_mask = embeddings.abs().sum(dim=1) > 0 (embeddings == logits
        # in the PyTorch module, so the check on logits is equivalent).
        valid = jnp.sum(jnp.abs(x), axis=0, keepdims=True) > 0.0   # (1, TB)

        # Stable log-softmax cross-entropy (per sample).
        mx = jnp.max(x, axis=0, keepdims=True)              # (1, TB)
        shifted = x - mx
        lse = jnp.log(jnp.sum(jnp.exp(shifted), axis=0, keepdims=True))
        lab_logit = jnp.sum(jnp.where(onehot, shifted, 0.0),
                            axis=0, keepdims=True)
        ce = lse - lab_logit                                 # (1, TB)

        # Unbiased class-variance of softmax(x / T): reuse the row max
        # (max(x/T) == max(x)/T for T > 0) and use sum(p) = 1:
        #   var = (sum(p^2) - 1/C) / (C-1) = (s2 / s1^2 - 1/C) / (C-1).
        ez = jnp.exp(shifted * inv_temp)
        s1 = jnp.sum(ez, axis=0, keepdims=True)
        s2 = jnp.sum(ez * ez, axis=0, keepdims=True)
        r = pl.reciprocal(s1, approx=True)
        r = r * (2.0 - s1 * r)                               # Newton refinement
        var_row = (s2 * r * r - inv_c) * inv_cm1             # (1, TB)

        acc_ref[row0 + 0:row0 + 1, :] += jnp.where(valid, ce, 0.0)
        acc_ref[row0 + 1:row0 + 2, :] += jnp.where(valid, var_row, 0.0)
        acc_ref[row0 + 2:row0 + 3, :] += valid.astype(jnp.float32)

    accumulate(uah_ref, 0)
    accumulate(phy_ref, 3)

    @pl.when(step == pl.num_programs(0) - 1)
    def _finalize():
        sums = jnp.sum(acc_ref[...], axis=1, keepdims=True)  # (8, 1)
        out_ref[...] = jnp.broadcast_to(sums, out_ref.shape)  # unmasked store


@functools.partial(jax.jit, static_argnums=(3,))
def variance_aware_loss(uah_emb, physio_emb, labels, temperature=0.1):
    """Pallas forward for VarianceAwareLoss (base_loss_fn = cross-entropy).

    Returns:
      weighted_loss: scalar f32
      variances:     {'uah': f32, 'physio': f32}
      present:       {'uah': bool, 'physio': bool} (modality had valid samples,
                     i.e. it would appear in the PyTorch dicts)
    """
    b, c = uah_emb.shape
    assert physio_emb.shape == (b, c)
    assert c >= 2, "unbiased class variance (torch.var) needs >= 2 classes"
    assert float(temperature) > 0.0

    # Lane-dense batch tile (multiple of 128); capped so the double-buffered
    # working set stays small even under v7x's 64 MiB VMEM / scoped defaults.
    tb = min(_round_up(b, 128), 2048)
    b_pad = _round_up(b, tb)
    pad = b_pad - b
    grid = (b_pad // tb,)

    def prep_logits(x):
        xt = x.T                                  # (C, B): batch on the lane axis
        if pad:
            xt = jnp.pad(xt, ((0, 0), (0, pad)))  # zero rows -> invalid -> masked
        return xt

    uah_t = prep_logits(uah_emb)
    phy_t = prep_logits(physio_emb)
    lab = labels.astype(jnp.int32).reshape(1, b)
    if pad:
        lab = jnp.pad(lab, ((0, 0), (0, pad)))

    itemsize = max(uah_emb.dtype.itemsize, physio_emb.dtype.itemsize)
    cost = pl.CostEstimate(
        flops=2 * b_pad * (14 * c + 12),
        transcendentals=2 * b_pad * (2 * c + 2),
        bytes_accessed=2 * b_pad * c * itemsize + b_pad * 4 + 8 * 128 * 4,
    )

    kernel = functools.partial(
        _variance_aware_loss_kernel,
        inv_temp=1.0 / float(temperature),
        num_classes=c,
    )

    sums = pl.pallas_call(
        kernel,
        out_shape=jax.ShapeDtypeStruct((8, 128), jnp.float32),
        grid_spec=pltpu.PrefetchScalarGridSpec(
            num_scalar_prefetch=0,
            grid=grid,
            in_specs=[
                pl.BlockSpec((c, tb), lambda i: (0, i)),
                pl.BlockSpec((c, tb), lambda i: (0, i)),
                pl.BlockSpec((1, tb), lambda i: (0, i)),
            ],
            out_specs=pl.BlockSpec((8, 128), lambda i: (0, 0)),
            scratch_shapes=[pltpu.VMEM((8, tb), jnp.float32)],
        ),
        compiler_params=pltpu.CompilerParams(
            dimension_semantics=("arbitrary",)),
        cost_estimate=cost,
    )(uah_t, phy_t, lab)

    # Scalar epilogue on the six reduced sums (tiny; fused by XLA under jit).
    col = sums[:, 0]
    loss_sum_u, var_sum_u, cnt_u = col[0], col[1], col[2]
    loss_sum_p, var_sum_p, cnt_p = col[3], col[4], col[5]

    denom_u = jnp.maximum(cnt_u, 1.0)
    denom_p = jnp.maximum(cnt_p, 1.0)
    loss_u = loss_sum_u / denom_u
    loss_p = loss_sum_p / denom_p
    var_u = var_sum_u / denom_u
    var_p = var_sum_p / denom_p

    has_u = cnt_u > 0.0
    has_p = cnt_p > 0.0
    total_var = var_u + var_p + 1e-8
    weighted_both = (var_p / total_var) * loss_u + (var_u / total_var) * loss_p
    weighted_single = (jnp.where(has_u, loss_u, 0.0)
                       + jnp.where(has_p, loss_p, 0.0))
    weighted = jnp.where(jnp.logical_and(has_u, has_p),
                         weighted_both, weighted_single)

    variances = {"uah": var_u, "physio": var_p}
    present = {"uah": has_u, "physio": has_p}
    return weighted, variances, present


def variance_aware_loss_ref(uah_emb, physio_emb, labels, temperature=0.1):
    """Pure-JAX reference mirroring the PyTorch module."""
    onehot = jax.nn.one_hot(labels, uah_emb.shape[1], dtype=jnp.float32)

    def stats(x):
        valid = jnp.sum(jnp.abs(x), axis=1) > 0.0
        count = jnp.sum(valid.astype(jnp.float32))
        denom = jnp.maximum(count, 1.0)
        logp = jax.nn.log_softmax(x, axis=1)
        ce = -jnp.sum(onehot * logp, axis=1)
        loss = jnp.sum(jnp.where(valid, ce, 0.0)) / denom
        p = jax.nn.softmax(x / temperature, axis=1)
        var = jnp.var(p, axis=1, ddof=1)
        vmean = jnp.sum(jnp.where(valid, var, 0.0)) / denom
        return loss, vmean, count

    lu, vu, cu = stats(uah_emb)
    lp, vp, cp = stats(physio_emb)
    has_u, has_p = cu > 0, cp > 0
    total_var = vu + vp + 1e-8
    weighted = jnp.where(
        jnp.logical_and(has_u, has_p),
        (vp / total_var) * lu + (vu / total_var) * lp,
        jnp.where(has_u, lu, 0.0) + jnp.where(has_p, lp, 0.0))
    return weighted, {"uah": vu, "physio": vp}, {"uah": has_u, "physio": has_p}


if __name__ == "__main__":
    B, C = 8, 4   # batch=8 samples, 4 classes
    key = jax.random.PRNGKey(0)
    k1, k2, k3 = jax.random.split(key, 3)
    uah = jax.random.normal(k1, (B, C), dtype=jnp.float32)
    phy = jax.random.normal(k2, (B, C), dtype=jnp.float32)
    labels = jax.random.randint(k3, (B,), 0, C, dtype=jnp.int32)
    # Mark two physio samples as missing (all-zero embeddings) to exercise the
    # valid_mask path of the PyTorch module.
    phy = phy.at[1].set(0.0)
    phy = phy.at[5].set(0.0)

    # Case 1: both modalities have valid samples (variance-weighted branch).
    w, variances, present = variance_aware_loss(uah, phy, labels, 0.1)
    w = jax.block_until_ready(w)
    w_ref, var_ref, _ = variance_aware_loss_ref(uah, phy, labels, 0.1)
    assert jnp.allclose(w, w_ref, atol=1e-5, rtol=1e-4), (w, w_ref)
    assert jnp.allclose(variances["uah"], var_ref["uah"], atol=1e-5, rtol=1e-4)
    assert jnp.allclose(variances["physio"], var_ref["physio"], atol=1e-5, rtol=1e-4)
    assert bool(present["uah"]) and bool(present["physio"])
    # Mimic the PyTorch return structure: only modalities that contributed.
    var_dict = {k: float(v) for k, v in variances.items() if bool(present[k])}
    assert set(var_dict) == {"uah", "physio"}

    # Case 2: one modality entirely missing (sum-of-present-losses branch).
    phy_missing = jnp.zeros_like(phy)
    w2, variances2, present2 = variance_aware_loss(uah, phy_missing, labels, 0.1)
    w2 = jax.block_until_ready(w2)
    w2_ref, _, _ = variance_aware_loss_ref(uah, phy_missing, labels, 0.1)
    assert jnp.allclose(w2, w2_ref, atol=1e-5, rtol=1e-4), (w2, w2_ref)
    assert bool(present2["uah"]) and not bool(present2["physio"])

    print("KERNEL_OK")
</pallas_src>

<mosaic_0001>
module attributes {stable_mosaic.version = 11 : i64} {
  func.func @_variance_aware_loss_kernel(%arg0: i32, %arg1: memref<4x128xf32, #tpu.memory_space<vmem>>, %arg2: memref<4x128xf32, #tpu.memory_space<vmem>>, %arg3: memref<1x128xi32, #tpu.memory_space<vmem>>, %arg4: memref<8x128xf32, #tpu.memory_space<vmem>>, %arg5: memref<8x128xf32, #tpu.memory_space<vmem>>) attributes {dimension_semantics = [#tpu.dimension_semantics<arbitrary>], iteration_bounds = array<i64: 1>, scalar_prefetch = 0 : i64, scratch_operands = 1 : i64, tpu.core_type = #tpu.core_type<tc>, window_params = [{transform_indices = @transform_0, window_bounds = array<i64: 4, 128>}, {transform_indices = @transform_1, window_bounds = array<i64: 4, 128>}, {transform_indices = @transform_2, window_bounds = array<i64: 1, 128>}, {pipeline_mode = #tpu.pipeline_mode<synchronous>, transform_indices = @transform_3, window_bounds = array<i64: 8, 128>}]} {
    %c0_i32 = arith.constant 0 : i32
    %0 = arith.cmpi eq, %arg0, %c0_i32 : i32
    %1 = arith.extui %0 : i1 to i32
    %c0_i32_0 = arith.constant 0 : i32
    %2 = arith.cmpi ne, %1, %c0_i32_0 : i32
    scf.if %2 {
      %cst_54 = arith.constant 0.000000e+00 : f32
      %116 = vector.broadcast %cst_54 : f32 to vector<8x128xf32>
      %c0_55 = arith.constant 0 : index
      %c0_56 = arith.constant 0 : index
      %117 = vector.load %arg5[%c0_55, %c0_56] : memref<8x128xf32, #tpu.memory_space<vmem>>, vector<8x128xf32>
      tpu.vector_store %arg5[%c0_55, %c0_56], %116 {strides = array<i32>} : memref<8x128xf32, #tpu.memory_space<vmem>>, vector<8x128xf32>,
    } else {
    }
    %c0 = arith.constant 0 : index
    %c0_1 = arith.constant 0 : index
    %3 = vector.load %arg3[%c0, %c0_1] : memref<1x128xi32, #tpu.memory_space<vmem>>, vector<1x128xi32>
    %4 = tpu.iota {dimensions = array<i32: 0>} : vector<4x128xi32>
    %5 = vector.broadcast %3 : vector<1x128xi32> to vector<4x128xi32>
    %6 = arith.cmpi eq, %4, %5 : vector<4x128xi32>
    %c0_2 = arith.constant 0 : index
    %c0_3 = arith.constant 0 : index
    %7 = vector.load %arg1[%c0_2, %c0_3] : memref<4x128xf32, #tpu.memory_space<vmem>>, vector<4x128xf32>
    %8 = math.absf %7 : vector<4x128xf32>
    %cst = arith.constant dense<0.000000e+00> : vector<128xf32>
    %9 = vector.multi_reduction <add>, %8, %cst [0] : vector<4x128xf32> to vector<128xf32>
    %10 = vector.shape_cast %9 : vector<128xf32> to vector<1x128xf32>
    %cst_4 = arith.constant 0.000000e+00 : f32
    %11 = vector.broadcast %cst_4 : f32 to vector<1x128xf32>
    %12 = arith.cmpf ogt, %10, %11 : vector<1x128xf32>
    %cst_5 = arith.constant dense<0xFF800000> : vector<128xf32>
    %13 = vector.multi_reduction <maximumf>, %7, %cst_5 [0] : vector<4x128xf32> to vector<128xf32>
    %14 = vector.shape_cast %13 : vector<128xf32> to vector<1x128xf32>
    %15 = vector.broadcast %14 : vector<1x128xf32> to vector<4x128xf32>
    %16 = arith.subf %7, %15 : vector<4x128xf32>
    %17 = math.exp %16 : vector<4x128xf32>
    %cst_6 = arith.constant dense<0.000000e+00> : vector<128xf32>
    %18 = vector.multi_reduction <add>, %17, %cst_6 [0] : vector<4x128xf32> to vector<128xf32>
    %19 = vector.shape_cast %18 : vector<128xf32> to vector<1x128xf32>
    %20 = math.log %19 : vector<1x128xf32>
    %cst_7 = arith.constant 0.000000e+00 : f32
    %21 = vector.broadcast %cst_7 : f32 to vector<4x128xf32>
    %22 = arith.select %6, %16, %21 : vector<4x128xi1>, vector<4x128xf32>
    %cst_8 = arith.constant dense<0.000000e+00> : vector<128xf32>
    %23 = vector.multi_reduction <add>, %22, %cst_8 [0] : vector<4x128xf32> to vector<128xf32>
    %24 = vector.shape_cast %23 : vector<128xf32> to vector<1x128xf32>
    %25 = arith.subf %20, %24 : vector<1x128xf32>
    %cst_9 = arith.constant 1.000000e+01 : f32
    %26 = vector.broadcast %cst_9 : f32 to vector<4x128xf32>
    %27 = arith.mulf %16, %26 : vector<4x128xf32>
    %28 = math.exp %27 : vector<4x128xf32>
    %cst_10 = arith.constant dense<0.000000e+00> : vector<128xf32>
    %29 = vector.multi_reduction <add>, %28, %cst_10 [0] : vector<4x128xf32> to vector<128xf32>
    %30 = vector.shape_cast %29 : vector<128xf32> to vector<1x128xf32>
    %31 = arith.mulf %28, %28 : vector<4x128xf32>
    %cst_11 = arith.constant dense<0.000000e+00> : vector<128xf32>
    %32 = vector.multi_reduction <add>, %31, %cst_11 [0] : vector<4x128xf32> to vector<128xf32>
    %33 = vector.shape_cast %32 : vector<128xf32> to vector<1x128xf32>
    %34 = tpu.reciprocal %30 {approx = true} : vector<1x128xf32> -> vector<1x128xf32>
    %35 = arith.mulf %30, %34 : vector<1x128xf32>
    %cst_12 = arith.constant 2.000000e+00 : f32
    %36 = vector.broadcast %cst_12 : f32 to vector<1x128xf32>
    %37 = arith.subf %36, %35 : vector<1x128xf32>
    %38 = arith.mulf %34, %37 : vector<1x128xf32>
    %39 = arith.mulf %33, %38 : vector<1x128xf32>
    %40 = arith.mulf %39, %38 : vector<1x128xf32>
    %cst_13 = arith.constant 2.500000e-01 : f32
    %41 = vector.broadcast %cst_13 : f32 to vector<1x128xf32>
    %42 = arith.subf %40, %41 : vector<1x128xf32>
    %cst_14 = arith.constant 0.333333343 : f32
    %43 = vector.broadcast %cst_14 : f32 to vector<1x128xf32>
    %44 = arith.mulf %42, %43 : vector<1x128xf32>
    %c0_15 = arith.constant 0 : index
    %c0_16 = arith.constant 0 : index
    %45 = vector.load %arg5[%c0_15, %c0_16] : memref<8x128xf32, #tpu.memory_space<vmem>>, vector<1x128xf32>
    %cst_17 = arith.constant 0.000000e+00 : f32
    %46 = vector.broadcast %cst_17 : f32 to vector<1x128xf32>
    %47 = arith.select %12, %25, %46 : vector<1x128xi1>, vector<1x128xf32>
    %48 = arith.addf %45, %47 : vector<1x128xf32>
    %c0_18 = arith.constant 0 : index
    %c0_19 = arith.constant 0 : index
    %49 = vector.load %arg5[%c0_18, %c0_19] : memref<8x128xf32, #tpu.memory_space<vmem>>, vector<1x128xf32>
    tpu.vector_store %arg5[%c0_18, %c0_19], %48 {strides = array<i32>} : memref<8x128xf32, #tpu.memory_space<vmem>>, vector<1x128xf32>,
    %c1 = arith.constant 1 : index
    %c0_20 = arith.constant 0 : index
    %50 = vector.load %arg5[%c1, %c0_20] : memref<8x128xf32, #tpu.memory_space<vmem>>, vector<1x128xf32>
    %cst_21 = arith.constant 0.000000e+00 : f32
    %51 = vector.broadcast %cst_21 : f32 to vector<1x128xf32>
    %52 = arith.select %12, %44, %51 : vector<1x128xi1>, vector<1x128xf32>
    %53 = arith.addf %50, %52 : vector<1x128xf32>
    %c1_22 = arith.constant 1 : index
    %c0_23 = arith.constant 0 : index
    %54 = vector.load %arg5[%c1_22, %c0_23] : memref<8x128xf32, #tpu.memory_space<vmem>>, vector<1x128xf32>
    tpu.vector_store %arg5[%c1_22, %c0_23], %53 {strides = array<i32>} : memref<8x128xf32, #tpu.memory_space<vmem>>, vector<1x128xf32>,
    %c2 = arith.constant 2 : index
    %c0_24 = arith.constant 0 : index
    %55 = vector.load %arg5[%c2, %c0_24] : memref<8x128xf32, #tpu.memory_space<vmem>>, vector<1x128xf32>
    %56 = arith.extui %12 : vector<1x128xi1> to vector<1x128xi32>
    %57 = arith.sitofp %56 : vector<1x128xi32> to vector<1x128xf32>
    %58 = arith.addf %55, %57 : vector<1x128xf32>
    %c2_25 = arith.constant 2 : index
    %c0_26 = arith.constant 0 : index
    %59 = vector.load %arg5[%c2_25, %c0_26] : memref<8x128xf32, #tpu.memory_space<vmem>>, vector<1x128xf32>
    tpu.vector_store %arg5[%c2_25, %c0_26], %58 {strides = array<i32>} : memref<8x128xf32, #tpu.memory_space<vmem>>, vector<1x128xf32>,
    %c0_27 = arith.constant 0 : index
    %c0_28 = arith.constant 0 : index
    %60 = vector.load %arg2[%c0_27, %c0_28] : memref<4x128xf32, #tpu.memory_space<vmem>>, vector<4x128xf32>
    %61 = math.absf %60 : vector<4x128xf32>
    %cst_29 = arith.constant dense<0.000000e+00> : vector<128xf32>
    %62 = vector.multi_reduction <add>, %61, %cst_29 [0] : vector<4x128xf32> to vector<128xf32>
    %63 = vector.shape_cast %62 : vector<128xf32> to vector<1x128xf32>
    %cst_30 = arith.constant 0.000000e+00 : f32
    %64 = vector.broadcast %cst_30 : f32 to vector<1x128xf32>
    %65 = arith.cmpf ogt, %63, %64 : vector<1x128xf32>
    %cst_31 = arith.constant dense<0xFF800000> : vector<128xf32>
    %66 = vector.multi_reduction <maximumf>, %60, %cst_31 [0] : vector<4x128xf32> to vector<128xf32>
    %67 = vector.shape_cast %66 : vector<128xf32> to vector<1x128xf32>
    %68 = vector.broadcast %67 : vector<1x128xf32> to vector<4x128xf32>
    %69 = arith.subf %60, %68 : vector<4x128xf32>
    %70 = math.exp %69 : vector<4x128xf32>
    %cst_32 = arith.constant dense<0.000000e+00> : vector<128xf32>
    %71 = vector.multi_reduction <add>, %70, %cst_32 [0] : vector<4x128xf32> to vector<128xf32>
    %72 = vector.shape_cast %71 : vector<128xf32> to vector<1x128xf32>
    %73 = math.log %72 : vector<1x128xf32>
    %cst_33 = arith.constant 0.000000e+00 : f32
    %74 = vector.broadcast %cst_33 : f32 to vector<4x128xf32>
    %75 = arith.select %6, %69, %74 : vector<4x128xi1>, vector<4x128xf32>
    %cst_34 = arith.constant dense<0.000000e+00> : vector<128xf32>
    %76 = vector.multi_reduction <add>, %75, %cst_34 [0] : vector<4x128xf32> to vector<128xf32>
    %77 = vector.shape_cast %76 : vector<128xf32> to vector<1x128xf32>
    %78 = arith.subf %73, %77 : vector<1x128xf32>
    %cst_35 = arith.constant 1.000000e+01 : f32
    %79 = vector.broadcast %cst_35 : f32 to vector<4x128xf32>
    %80 = arith.mulf %69, %79 : vector<4x128xf32>
    %81 = math.exp %80 : vector<4x128xf32>
    %cst_36 = arith.constant dense<0.000000e+00> : vector<128xf32>
    %82 = vector.multi_reduction <add>, %81, %cst_36 [0] : vector<4x128xf32> to vector<128xf32>
    %83 = vector.shape_cast %82 : vector<128xf32> to vector<1x128xf32>
    %84 = arith.mulf %81, %81 : vector<4x128xf32>
    %cst_37 = arith.constant dense<0.000000e+00> : vector<128xf32>
    %85 = vector.multi_reduction <add>, %84, %cst_37 [0] : vector<4x128xf32> to vector<128xf32>
    %86 = vector.shape_cast %85 : vector<128xf32> to vector<1x128xf32>
    %87 = tpu.reciprocal %83 {approx = true} : vector<1x128xf32> -> vector<1x128xf32>
    %88 = arith.mulf %83, %87 : vector<1x128xf32>
    %cst_38 = arith.constant 2.000000e+00 : f32
    %89 = vector.broadcast %cst_38 : f32 to vector<1x128xf32>
    %90 = arith.subf %89, %88 : vector<1x128xf32>
    %91 = arith.mulf %87, %90 : vector<1x128xf32>
    %92 = arith.mulf %86, %91 : vector<1x128xf32>
    %93 = arith.mulf %92, %91 : vector<1x128xf32>
    %cst_39 = arith.constant 2.500000e-01 : f32
    %94 = vector.broadcast %cst_39 : f32 to vector<1x128xf32>
    %95 = arith.subf %93, %94 : vector<1x128xf32>
    %cst_40 = arith.constant 0.333333343 : f32
    %96 = vector.broadcast %cst_40 : f32 to vector<1x128xf32>
    %97 = arith.mulf %95, %96 : vector<1x128xf32>
    %c3 = arith.constant 3 : index
    %c0_41 = arith.constant 0 : index
    %98 = vector.load %arg5[%c3, %c0_41] : memref<8x128xf32, #tpu.memory_space<vmem>>, vector<1x128xf32>
    %cst_42 = arith.constant 0.000000e+00 : f32
    %99 = vector.broadcast %cst_42 : f32 to vector<1x128xf32>
    %100 = arith.select %65, %78, %99 : vector<1x128xi1>, vector<1x128xf32>
    %101 = arith.addf %98, %100 : vector<1x128xf32>
    %c3_43 = arith.constant 3 : index
    %c0_44 = arith.constant 0 : index
    %102 = vector.load %arg5[%c3_43, %c0_44] : memref<8x128xf32, #tpu.memory_space<vmem>>, vector<1x128xf32>
    tpu.vector_store %arg5[%c3_43, %c0_44], %101 {strides = array<i32>} : memref<8x128xf32, #tpu.memory_space<vmem>>, vector<1x128xf32>,
    %c4 = arith.constant 4 : index
    %c0_45 = arith.constant 0 : index
    %103 = vector.load %arg5[%c4, %c0_45] : memref<8x128xf32, #tpu.memory_space<vmem>>, vector<1x128xf32>
    %cst_46 = arith.constant 0.000000e+00 : f32
    %104 = vector.broadcast %cst_46 : f32 to vector<1x128xf32>
    %105 = arith.select %65, %97, %104 : vector<1x128xi1>, vector<1x128xf32>
    %106 = arith.addf %103, %105 : vector<1x128xf32>
    %c4_47 = arith.constant 4 : index
    %c0_48 = arith.constant 0 : index
    %107 = vector.load %arg5[%c4_47, %c0_48] : memref<8x128xf32, #tpu.memory_space<vmem>>, vector<1x128xf32>
    tpu.vector_store %arg5[%c4_47, %c0_48], %106 {strides = array<i32>} : memref<8x128xf32, #tpu.memory_space<vmem>>, vector<1x128xf32>,
    %c5 = arith.constant 5 : index
    %c0_49 = arith.constant 0 : index
    %108 = vector.load %arg5[%c5, %c0_49] : memref<8x128xf32, #tpu.memory_space<vmem>>, vector<1x128xf32>
    %109 = arith.extui %65 : vector<1x128xi1> to vector<1x128xi32>
    %110 = arith.sitofp %109 : vector<1x128xi32> to vector<1x128xf32>
    %111 = arith.addf %108, %110 : vector<1x128xf32>
    %c5_50 = arith.constant 5 : index
    %c0_51 = arith.constant 0 : index
    %112 = vector.load %arg5[%c5_50, %c0_51] : memref<8x128xf32, #tpu.memory_space<vmem>>, vector<1x128xf32>
    tpu.vector_store %arg5[%c5_50, %c0_51], %111 {strides = array<i32>} : memref<8x128xf32, #tpu.memory_space<vmem>>, vector<1x128xf32>,
    %c0_i32_52 = arith.constant 0 : i32
    %113 = arith.cmpi eq, %arg0, %c0_i32_52 : i32
    %114 = arith.extui %113 : i1 to i32
    %c0_i32_53 = arith.constant 0 : i32
    %115 = arith.cmpi ne, %114, %c0_i32_53 : i32
    scf.if %115 {
      %c0_54 = arith.constant 0 : index
      %c0_55 = arith.constant 0 : index
      %116 = vector.load %arg5[%c0_54, %c0_55] : memref<8x128xf32, #tpu.memory_space<vmem>>, vector<8x128xf32>
      %cst_56 = arith.constant dense<0.000000e+00> : vector<8xf32>
      %117 = vector.multi_reduction <add>, %116, %cst_56 [1] : vector<8x128xf32> to vector<8xf32>
      %118 = vector.shape_cast %117 : vector<8xf32> to vector<8x1xf32>
      %119 = vector.shape_cast %118 : vector<8x1xf32> to vector<8x1xf32>
      %120 = vector.broadcast %119 : vector<8x1xf32> to vector<8x128xf32>
      %c0_57 = arith.constant 0 : index
      %c0_58 = arith.constant 0 : index
      %121 = vector.load %arg4[%c0_57, %c0_58] : memref<8x128xf32, #tpu.memory_space<vmem>>, vector<8x128xf32>
      tpu.vector_store %arg4[%c0_57, %c0_58], %120 {strides = array<i32>} : memref<8x128xf32, #tpu.memory_space<vmem>>, vector<8x128xf32>,
    } else {
    }
    return
  }
  func.func @transform_0(%arg0: i32) -> (i32, i32) {
    %c0_i32 = arith.constant 0 : i32
    %c0_i32_0 = arith.constant 0 : i32
    return %c0_i32, %arg0 : i32, i32
  }
  func.func @transform_1(%arg0: i32) -> (i32, i32) {
    %c0_i32 = arith.constant 0 : i32
    %c0_i32_0 = arith.constant 0 : i32
    return %c0_i32, %arg0 : i32, i32
  }
  func.func @transform_2(%arg0: i32) -> (i32, i32) {
    %c0_i32 = arith.constant 0 : i32
    %c0_i32_0 = arith.constant 0 : i32
    return %c0_i32, %arg0 : i32, i32
  }
  func.func @transform_3(%arg0: i32) -> (i32, i32) {
    %c0_i32 = arith.constant 0 : i32
    %c0_i32_0 = arith.constant 0 : i32
    %c0_i32_1 = arith.constant 0 : i32
    return %c0_i32, %c0_i32_0 : i32, i32
  }
}

</mosaic_0001>

<bundles_post_ra>
// kernel: variance_aware_loss.1
= control target key start
LH: loop header
LB: loop body
LE: loop exit
PB: predicated region body
PF: predicated region fallthrough
CT: control target
= control target key end

     0   :  { %vm29_vm0 = vcmask 1043456   ;;  %v215_v0 = vmov 0.0   ;;  %v20_v30 = vlaneseq  ;;  %s278_s0 = inlined_call_operand.vmem [shape: f32[4,128], index: 0, kind: input, shape index: {}]   ;;  %s279_s1 = inlined_call_operand.vmem [shape: f32[4,128], index: 1, kind: input, shape index: {}]   ;;  %s280_s2 = inlined_call_operand.vmem [shape: s32[1,128], index: 2, kind: input, shape index: {}]   ;;  %s281_s3 = inlined_call_operand.vmem [shape: f32[8,128], index: 3, kind: output, shape index: {}]  }
   0x1   :  { %18 = vst [vmem:[#allocation2] sm:$0xff] %v215_v0  ;;  %v27_v1 = vld [vmem:[%s278_s0] sm:$0xf] }
   0x2   :  { %v105_v2 = vld [vmem:[%s279_s1] sm:$0xf]  ;;  %v28_v3 = vand.u32 2147483647, %v27_v1  ;;  %v38_v4 = vsel %vm29_vm0, %v27_v1, -inf  ;;  %v21_v41 = vshrl.u32 %v20_v30, 7 }
   0x3   :  { %v106_v5 = vand.u32 2147483647, %v105_v2  ;;  %v39_v6 = vrot.slane %v38_v4, 4  ;;  %v115_v7 = vsel %vm29_vm0, %v105_v2, -inf  ;;  %v193_v44 = vld [vmem:[%s280_s2] ss:$0 sm:$0xff] }
   0x4   :  { %v30_v8 = vsel %vm29_vm0, %v28_v3, 0.0  ;;  %v116_v10 = vrot.slane %v115_v7, 4  ;;  %vm26_vm3 = vcmp.eq.s32.totalorder %v21_v41, %v193_v44 }
   0x5   :  { %v107_v9 = vsel %vm29_vm0, %v106_v5, 0.0  ;;  %v31_v11 = vrot.slane %v30_v8, 4  ;;  %v40_v12 = vmax.f32 %v38_v4, %v39_v6 }
   0x6   :  { %v108_v13 = vrot.slane %v107_v9, 4  ;;  %v117_v14 = vmax.f32 %v115_v7, %v116_v10 }
   0x7   :  { %v32_v15 = vadd.f32 %v31_v11, %v30_v8  ;;  %v41_v16 = vrot.slane %v40_v12, 2 }
   0x8   :  { %v109_v17 = vadd.f32 %v108_v13, %v107_v9  ;;  %v118_v21 = vrot.slane %v117_v14, 2  ;;  %v100_v35 = vld [vmem:[#allocation2 + $0x2] sm:$0x1]  ;;  %v177_v40 = vld [vmem:[#allocation2 + $0x5] sm:$0x1] }
   0x9   :  { %v33_v18 = vrot.slane %v32_v15, 2  ;;  %v42_v19 = vmax.f32 %v40_v12, %v41_v16 }
   0xa   :  { %v110_v20 = vrot.slane %v109_v17, 2  ;;  %v119_v25 = vmax.f32 %v117_v14, %v118_v21 }
   0xb   :  { %v34_v22 = vadd.f32 %v33_v18, %v32_v15  ;;  %v43_v23 = vrot.slane %v42_v19, 1 }
   0xc   :  { %v111_v24 = vadd.f32 %v110_v20, %v109_v17  ;;  %v120_v29 = vrot.slane %v119_v25, 1 }
   0xd   :  { %v35_v26 = vrot.slane %v34_v22, 1  ;;  %v44_v27 = vmax.f32 %v42_v19, %v43_v23 }
   0xe   :  { %v112_v28 = vrot.slane %v111_v24, 1  ;;  %v121_v34 = vmax.f32 %v119_v25, %v120_v29 }
   0xf   :  { %v246_v31 = vadd.f32 %v35_v26, %v34_v22  ;;  %v45_v32 = vsub.f32 %v27_v1, %v44_v27 }
  0x10   :  { %v248_v33 = vadd.f32 %v112_v28, %v111_v24  ;;  %v122_v39 = vsub.f32 %v105_v2, %v121_v34 }
  0x11   :  { %vm37_vm1 = vcmp.gt.f32.partialorder %v246_v31, 0.0  ;;  %v46_v36 = vmul.f32 1.442695, %v45_v32  ;;  %v66_v37 = vmul.f32 10.0, %v45_v32  ;;  %v57_v50 = vsel %vm26_vm3, %v45_v32, 0.0 }
  0x12   :  { %v195_v38 = vsel %vm37_vm1, 1.0, %v215_v0  ;;  %vm114_vm2 = vcmp.gt.f32.partialorder %v248_v33, 0.0  ;;  %v123_v45 = vmul.f32 1.442695, %v122_v39  ;;  %v143_v46 = vmul.f32 10.0, %v122_v39 }
  0x13   :  { %199 = vpow2.f32 %v46_v36  ;;  %v67_v42 = vmul.f32 1.442695, %v66_v37  ;;  %v103_v43 = vadd.f32 %v195_v38, %v100_v35  ;;  %v197_v47 = vsel %vm114_vm2, 1.0, %v215_v0 }
  0x14   :  { %v180_v48 = vadd.f32 %v197_v47, %v177_v40  ;;  %v144_v49 = vmul.f32 1.442695, %v143_v46  ;;  %v134_v51 = vsel %vm26_vm3, %v122_v39, 0.0  ;;  %v58_v53 = vsel %vm29_vm0, %v57_v50, 0.0 }
  0x15   :  { %201 = vpow2.f32 %v67_v42  ;;  %104 = vst [vmem:[#allocation2 + $0x2] sm:$0x1] %v103_v43  ;;  %v135_v57 = vsel %vm29_vm0, %v134_v51, 0.0  ;;  %v59_v59 = vrot.slane %v58_v53, 4 }
  0x16   :  { %203 = vpow2.f32 %v123_v45  ;;  %181 = vst [vmem:[#allocation2 + $0x5] sm:$0x1] %v180_v48  ;;  %v136_v3 = vrot.slane %v135_v57, 4 }
  0x17   :  { %205 = vpow2.f32 %v144_v49  ;;  %v60_v8 = vadd.f32 %v59_v59, %v58_v53 }
  0x18   :  { %v137_v20 = vadd.f32 %v136_v3, %v135_v57 }
  0x19   :  { %v61_v21 = vrot.slane %v60_v8, 2 }
  0x1a   :  { %v138_v32 = vrot.slane %v137_v20, 2 }
  0x1b   :  { %v62_v34 = vadd.f32 %v61_v21, %v60_v8 }
  0x1c   :  { %v139_v40 = vadd.f32 %v138_v32, %v137_v20 }
  0x1d   :  { %v200_v52 = vpop.eup %199  ;;  %v63_v41 = vrot.slane %v62_v34, 1 }
  0x1e   :  { %v48_v54 = vsel %vm29_vm0, %v200_v52, 0.0  ;;  %v140_v44 = vrot.slane %v139_v40, 1 }
  0x1f   :  { %v202_v55 = vpop.eup %201  ;;  %v49_v56 = vrot.slane %v48_v54, 4  ;;  %v64_v45 = vadd.f32 %v63_v41, %v62_v34 }
  0x20   :  { %v204_v58 = vpop.eup %203  ;;  %v69_v60 = vsel %vm29_vm0, %v202_v55, 0.0  ;;  %v76_v61 = vmul.f32 %v202_v55, %v202_v55  ;;  %v141_v51 = vadd.f32 %v140_v44, %v139_v40  ;;  %v92_v55 = vld [vmem:[#allocation2] sm:$0x1] }
  0x21   :  { %v50_v62 = vadd.f32 %v49_v56, %v48_v54  ;;  %v70_v63 = vrot.slane %v69_v60, 4  ;;  %v125_v0 = vsel %vm29_vm0, %v204_v58, 0.0  ;;  %v206_v1 = vpop.eup %205 }
  0x22   :  { %v126_v2 = vrot.slane %v125_v0, 4  ;;  %v77_v6 = vsel %vm29_vm0, %v76_v61, 0.0  ;;  %v146_v7 = vsel %vm29_vm0, %v206_v1, 0.0  ;;  %v153_v11 = vmul.f32 %v206_v1, %v206_v1  ;;  %v169_v1 = vld [vmem:[#allocation2 + $0x3] sm:$0x1] }
  0x23   :  { %v51_v4 = vrot.slane %v50_v62, 2  ;;  %v71_v5 = vadd.f32 %v70_v63, %v69_v60  ;;  %v147_v10 = vrot.slane %v146_v7, 4  ;;  %v78_v14 = vrot.slane %v77_v6, 4 }
  0x24   :  { %v127_v9 = vadd.f32 %v126_v2, %v125_v0  ;;  %v154_v17 = vsel %vm29_vm0, %v153_v11, 0.0 }
  0x25   :  { %v52_v12 = vadd.f32 %v51_v4, %v50_v62  ;;  %v72_v13 = vrot.slane %v71_v5, 2  ;;  %v148_v16 = vadd.f32 %v147_v10, %v146_v7  ;;  %v155_v26 = vrot.slane %v154_v17, 4 }
  0x26   :  { %v128_v15 = vrot.slane %v127_v9, 2  ;;  %v79_v27 = vadd.f32 %v78_v14, %v77_v6  ;;  %v96_v14 = vld [vmem:[#allocation2 + $0x1] sm:$0x1] }
  0x27   :  { %v53_v18 = vrot.slane %v52_v12, 1  ;;  %v73_v19 = vadd.f32 %v72_v13, %v71_v5  ;;  %v149_v23 = vrot.slane %v148_v16, 2  ;;  %v156_v37 = vadd.f32 %v155_v26, %v154_v17 }
  0x28   :  { %v129_v22 = vadd.f32 %v128_v15, %v127_v9  ;;  %v80_v38 = vrot.slane %v79_v27, 2 }
  0x29   :  { %v54_v24 = vadd.f32 %v53_v18, %v52_v12  ;;  %v74_v25 = vrot.slane %v73_v19, 1  ;;  %v150_v29 = vadd.f32 %v149_v23, %v148_v16  ;;  %v157_v42 = vrot.slane %v156_v37, 2 }
  0x2a   :  { %v130_v28 = vrot.slane %v129_v22, 1  ;;  %v81_v43 = vadd.f32 %v80_v38, %v79_v27 }
  0x2b   :  { %207 = vlog2.f32 %v54_v24  ;;  %v75_v30 = vadd.f32 %v74_v25, %v73_v19  ;;  %v151_v36 = vrot.slane %v150_v29, 1  ;;  %v158_v47 = vadd.f32 %v157_v42, %v156_v37  ;;  %v173_v19 = vld [vmem:[#allocation2 + $0x4] sm:$0x1] }
  0x2c   :  { %v131_v35 = vadd.f32 %v130_v28, %v129_v22  ;;  %v82_v49 = vrot.slane %v81_v43, 1 }
  0x2d   :  { %209 = vrcp.f32 %v75_v30  ;;  %v152_v39 = vadd.f32 %v151_v36, %v150_v29  ;;  %v159_v57 = vrot.slane %v158_v47, 1 }
  0x2e   :  { %211 = vlog2.f32 %v131_v35  ;;  %v83_v59 = vadd.f32 %v82_v49, %v81_v43 }
  0x2f   :  { %213 = vrcp.f32 %v152_v39  ;;  %v160_v3 = vadd.f32 %v159_v57, %v158_v47 }
  0x35   :  { %v208_v46 = vpop.eup %207 }
  0x36   :  { %v56_v48 = vmul.f32 0.6931472, %v208_v46 }
  0x37   :  { %v210_v50 = vpop.eup %209 }
  0x38   :  { %v212_v52 = vpop.eup %211  ;;  %v65_v53 = vsub.f32 %v56_v48, %v64_v45  ;;  %v85_v54 = vmul.f32 %v210_v50, %v75_v30 }
  0x39   :  { %v133_v56 = vmul.f32 0.6931472, %v212_v52  ;;  %v214_v58 = vpop.eup %213 }
  0x3a   :  { %v86_v60 = vsub.f32 2.0, %v85_v54  ;;  %v93_v61 = vsel %vm37_vm1, %v65_v53, 0.0  ;;  %v162_v0 = vmul.f32 %v214_v58, %v152_v39 }
  0x3b   :  { %v94_v62 = vadd.f32 %v93_v61, %v92_v55  ;;  %v142_v63 = vsub.f32 %v133_v56, %v141_v51 }
  0x3c   :  { %v87_v2 = vmul.f32 %v210_v50, %v86_v60  ;;  %v163_v4 = vsub.f32 2.0, %v162_v0 }
  0x3d   :  { %95 = vst [vmem:[#allocation2] sm:$0x1] %v94_v62  ;;  %v170_v5 = vsel %vm114_vm2, %v142_v63, 0.0 }
  0x3e   :  { %v88_v6 = vmul.f32 %v87_v2, %v83_v59  ;;  %v171_v7 = vadd.f32 %v170_v5, %v169_v1  ;;  %v164_v8 = vmul.f32 %v214_v58, %v163_v4 }
  0x40   :  { %v89_v9 = vmul.f32 %v88_v6, %v87_v2  ;;  %172 = vst [vmem:[#allocation2 + $0x3] sm:$0x1] %v171_v7  ;;  %v165_v10 = vmul.f32 %v164_v8, %v160_v3 }
  0x42   :  { %v194_v11 = vadd.f32 -0.25, %v89_v9  ;;  %v166_v12 = vmul.f32 %v165_v10, %v164_v8 }
  0x44   :  { %v91_v13 = vmul.f32 0.33333334, %v194_v11  ;;  %v196_v15 = vadd.f32 -0.25, %v166_v12 }
  0x46   :  { %v97_v16 = vsel %vm37_vm1, %v91_v13, 0.0  ;;  %v168_v18 = vmul.f32 0.33333334, %v196_v15 }
  0x47   :  { %v98_v17 = vadd.f32 %v97_v16, %v96_v14 }
  0x48   :  { %v174_v20 = vsel %vm114_vm2, %v168_v18, 0.0 }
  0x49   :  { %99 = vst [vmem:[#allocation2 + $0x1] sm:$0x1] %v98_v17  ;;  %v175_v21 = vadd.f32 %v174_v20, %v173_v19 }
  0x4b   :  { %176 = vst [vmem:[#allocation2 + $0x4] sm:$0x1] %v175_v21 }
  0x52   :  { %v185_v22 = vld [vmem:[#allocation2] sm:$0xff] }
  0x53   :  { %186 = vadd.xlane.f32.xlu0 %v185_v22 }
  0xe0   :  { %v187_v23 = vpop.xlane.xlu0 %186 }
  0xe1   :  { %188 = vst [vmem:[%s281_s3] sm:$0xff] %v187_v23 }

</bundles_post_ra>
